<compile_context>
chip_gen: v7x
topology: tpu7x:2x2x1
jax: 0.10.0
libtpu: 0.0.40
codegen_flags: <defaults>
</compile_context>

<pallas_src>
import functools

import jax
import jax.numpy as jnp
from jax.experimental import pallas as pl
from jax.experimental.pallas import tpu as pltpu


def _efficient_attention_kernel(x_ref, wk_ref, bk_ref, wq_ref, bq_ref,
                                wv_ref, bv_ref, wr_ref, br_ref, o_ref,
                                *, head_count):
    # x_ref / o_ref: (C, HW) for the current batch image (batch dim squeezed).
    x = x_ref[...].astype(jnp.float32)                       # (C, HW)
    C, HW = x.shape

    wk = wk_ref[...].astype(jnp.float32)                     # (kc, C)
    bk = bk_ref[...].astype(jnp.float32)                     # (kc, 1)
    wq = wq_ref[...].astype(jnp.float32)                     # (kc, C)
    bq = bq_ref[...].astype(jnp.float32)                     # (kc, 1)
    wv = wv_ref[...].astype(jnp.float32)                     # (vc, C)
    bv = bv_ref[...].astype(jnp.float32)                     # (vc, 1)
    wr = wr_ref[...].astype(jnp.float32)                     # (C, vc)
    br = br_ref[...].astype(jnp.float32)                     # (C, 1)

    kc = wk.shape[0]
    vc = wv.shape[0]
    hkc = kc // head_count
    hvc = vc // head_count

    def conv1x1(w, b):
        # (out_ch, C) @ (C, HW) done as C broadcast multiply-adds on the VPU
        # (channel counts are tiny; the MXU would be ~100% padding).
        acc = w[:, 0:1] * x[0:1, :]                          # (out_ch, HW)
        for c in range(1, C):
            acc = acc + w[:, c:c + 1] * x[c:c + 1, :]
        return acc + b                                       # lane-broadcast bias

    k = conv1x1(wk, bk)                                      # (kc, HW)
    q = conv1x1(wq, bq)                                      # (kc, HW)
    v = conv1x1(wv, bv)                                      # (vc, HW)

    # Accumulate reprojection + bias + residual directly (no concat of heads needed).
    out = x + br                                             # (C, HW)

    for i in range(head_count):
        k_h = k[i * hkc:(i + 1) * hkc, :]                    # (hkc, HW)
        q_h = q[i * hkc:(i + 1) * hkc, :]                    # (hkc, HW)
        v_h = v[i * hvc:(i + 1) * hvc, :]                    # (hvc, HW)

        # softmax over the spatial (lane) axis, per key channel
        k_m = jnp.max(k_h, axis=-1, keepdims=True)
        k_e = jnp.exp(k_h - k_m)
        key_sm = k_e / jnp.sum(k_e, axis=-1, keepdims=True)  # (hkc, HW)

        # softmax over the (tiny) head-channel axis, per spatial position
        q_m = jnp.max(q_h, axis=0, keepdims=True)
        q_e = jnp.exp(q_h - q_m)
        query_sm = q_e / jnp.sum(q_e, axis=0, keepdims=True)  # (hkc, HW)

        for b in range(hvc):
            # context column b: sum over HW of key_sm * value_row_b  -> (hkc, 1)
            ctx_col = jnp.sum(key_sm * v_h[b:b + 1, :], axis=-1, keepdims=True)
            # attended row b: sum over head-key channels of ctx * query  -> (1, HW)
            att_b = jnp.sum(ctx_col * query_sm, axis=0, keepdims=True)
            # reprojection: add W_r[:, j] * attended_row_b  (j = global value channel)
            j = i * hvc + b
            out = out + wr[:, j:j + 1] * att_b               # (C,1)*(1,HW) -> (C, HW)

    o_ref[...] = out.astype(o_ref.dtype)


def efficient_attention(x_nchw, wk, bk, wq, bq, wv, bv, wr, br, *, head_count=2):
    """Forward pass of EfficientAttention on an NCHW tensor."""
    N, C, H, W = x_nchw.shape
    HW = H * W
    kc = wk.shape[0]
    vc = wv.shape[0]
    assert kc % head_count == 0 and vc % head_count == 0

    x = x_nchw.reshape(N, C, HW)          # free reshape (NCHW is already row-major C, H*W)
    bk2, bq2, bv2, br2 = (b.reshape(-1, 1) for b in (bk, bq, bv, br))

    kernel = functools.partial(_efficient_attention_kernel, head_count=head_count)
    const = lambda n: (0, 0)              # tiny weight tiles, resident across the grid

    out = pl.pallas_call(
        kernel,
        out_shape=jax.ShapeDtypeStruct((N, C, HW), x_nchw.dtype),
        grid_spec=pltpu.PrefetchScalarGridSpec(
            num_scalar_prefetch=0,
            grid=(N,),
            in_specs=[
                pl.BlockSpec((None, C, HW), lambda n: (n, 0, 0)),   # x  (batch squeezed)
                pl.BlockSpec((kc, C), const),                       # W_keys
                pl.BlockSpec((kc, 1), const),                       # b_keys
                pl.BlockSpec((kc, C), const),                       # W_queries
                pl.BlockSpec((kc, 1), const),                       # b_queries
                pl.BlockSpec((vc, C), const),                       # W_values
                pl.BlockSpec((vc, 1), const),                       # b_values
                pl.BlockSpec((C, vc), const),                       # W_reprojection
                pl.BlockSpec((C, 1), const),                        # b_reprojection
            ],
            out_specs=pl.BlockSpec((None, C, HW), lambda n: (n, 0, 0)),
        ),
        compiler_params=pltpu.CompilerParams(
            dimension_semantics=("parallel",),
        ),
    )(x, wk, bk2, wq, bq2, wv, bv2, wr, br2)

    return out.reshape(N, C, H, W)


def _reference_forward(x, wk, bk, wq, bq, wv, bv, wr, br, head_count):
    """Plain-JAX transcription of the PyTorch forward (for the correctness check)."""
    N, C, H, W = x.shape
    HW = H * W
    xf = x.reshape(N, C, HW).astype(jnp.float32)
    keys = jnp.einsum('oc,nch->noh', wk, xf) + bk.reshape(1, -1, 1)
    queries = jnp.einsum('oc,nch->noh', wq, xf) + bq.reshape(1, -1, 1)
    values = jnp.einsum('oc,nch->noh', wv, xf) + bv.reshape(1, -1, 1)
    kc, vc = wk.shape[0], wv.shape[0]
    hkc, hvc = kc // head_count, vc // head_count
    heads = []
    for i in range(head_count):
        key_sm = jax.nn.softmax(keys[:, i * hkc:(i + 1) * hkc, :], axis=2)
        query_sm = jax.nn.softmax(queries[:, i * hkc:(i + 1) * hkc, :], axis=1)
        value = values[:, i * hvc:(i + 1) * hvc, :]
        context = jnp.einsum('nah,nbh->nab', key_sm, value)       # (N, hkc, hvc)
        att = jnp.einsum('nab,nah->nbh', context, query_sm)       # (N, hvc, HW)
        heads.append(att)
    agg = jnp.concatenate(heads, axis=1)                          # (N, vc, HW)
    reproj = jnp.einsum('cv,nvh->nch', wr, agg) + br.reshape(1, -1, 1)
    return (reproj + xf).reshape(N, C, H, W).astype(x.dtype)


if __name__ == "__main__":
    N, C, H, W = 2, 4, 16, 16
    key_channels, value_channels, head_count = 2, 2, 2

    key = jax.random.PRNGKey(0)
    k_x, k_wk, k_wq, k_wv, k_wr = jax.random.split(key, 5)
    x = jax.random.normal(k_x, (N, C, H, W), dtype=jnp.float32)

    def kaiming_uniform(rng, shape, fan_in):
        bound = (6.0 / fan_in) ** 0.5       # relu gain, mode='fan_in' (1x1 conv)
        return jax.random.uniform(rng, shape, jnp.float32, -bound, bound)

    wk = kaiming_uniform(k_wk, (key_channels, C), C)
    wq = kaiming_uniform(k_wq, (key_channels, C), C)
    wv = kaiming_uniform(k_wv, (value_channels, C), C)
    wr = kaiming_uniform(k_wr, (C, value_channels), value_channels)
    bk = jnp.zeros((key_channels,), jnp.float32)   # module inits biases to 0
    bq = jnp.zeros((key_channels,), jnp.float32)
    bv = jnp.zeros((value_channels,), jnp.float32)
    br = jnp.zeros((C,), jnp.float32)

    out = efficient_attention(x, wk, bk, wq, bq, wv, bv, wr, br, head_count=head_count)
    jax.block_until_ready(out)

    ref = _reference_forward(x, wk, bk, wq, bq, wv, bv, wr, br, head_count)
    assert out.shape == (N, C, H, W)
    max_err = float(jnp.max(jnp.abs(out - ref)))
    assert max_err < 1e-4, f"max abs err {max_err}"

    print("KERNEL_OK")
</pallas_src>

<mosaic_0001>
module attributes {stable_mosaic.version = 11 : i64} {
  func.func @_efficient_attention_kernel(%arg0: i32, %arg1: memref<1x4x256xf32, #tpu.memory_space<vmem>>, %arg2: memref<2x4xf32, #tpu.memory_space<vmem>>, %arg3: memref<2x1xf32, #tpu.memory_space<vmem>>, %arg4: memref<2x4xf32, #tpu.memory_space<vmem>>, %arg5: memref<2x1xf32, #tpu.memory_space<vmem>>, %arg6: memref<2x4xf32, #tpu.memory_space<vmem>>, %arg7: memref<2x1xf32, #tpu.memory_space<vmem>>, %arg8: memref<4x2xf32, #tpu.memory_space<vmem>>, %arg9: memref<4x1xf32, #tpu.memory_space<vmem>>, %arg10: memref<1x4x256xf32, #tpu.memory_space<vmem>>) attributes {dimension_semantics = [#tpu.dimension_semantics<parallel>], iteration_bounds = array<i64: 2>, scalar_prefetch = 0 : i64, scratch_operands = 0 : i64, tpu.core_type = #tpu.core_type<tc>, window_params = [{transform_indices = @transform_0, window_bounds = array<i64: 1, 4, 256>}, {pipeline_mode = #tpu.pipeline_mode<synchronous>, transform_indices = @transform_1, window_bounds = array<i64: 2, 4>}, {pipeline_mode = #tpu.pipeline_mode<synchronous>, transform_indices = @transform_2, window_bounds = array<i64: 2, 1>}, {pipeline_mode = #tpu.pipeline_mode<synchronous>, transform_indices = @transform_3, window_bounds = array<i64: 2, 4>}, {pipeline_mode = #tpu.pipeline_mode<synchronous>, transform_indices = @transform_4, window_bounds = array<i64: 2, 1>}, {pipeline_mode = #tpu.pipeline_mode<synchronous>, transform_indices = @transform_5, window_bounds = array<i64: 2, 4>}, {pipeline_mode = #tpu.pipeline_mode<synchronous>, transform_indices = @transform_6, window_bounds = array<i64: 2, 1>}, {pipeline_mode = #tpu.pipeline_mode<synchronous>, transform_indices = @transform_7, window_bounds = array<i64: 4, 2>}, {pipeline_mode = #tpu.pipeline_mode<synchronous>, transform_indices = @transform_8, window_bounds = array<i64: 4, 1>}, {transform_indices = @transform_9, window_bounds = array<i64: 1, 4, 256>}]} {
    %c0 = arith.constant 0 : index
    %c0_0 = arith.constant 0 : index
    %c0_1 = arith.constant 0 : index
    %0 = vector.load %arg1[%c0, %c0_0, %c0_1] : memref<1x4x256xf32, #tpu.memory_space<vmem>>, vector<1x4x256xf32>
    %1 = vector.shape_cast %0 : vector<1x4x256xf32> to vector<4x256xf32>
    %c0_2 = arith.constant 0 : index
    %c0_3 = arith.constant 0 : index
    %2 = vector.load %arg2[%c0_2, %c0_3] : memref<2x4xf32, #tpu.memory_space<vmem>>, vector<2x4xf32>
    %c0_4 = arith.constant 0 : index
    %c0_5 = arith.constant 0 : index
    %3 = vector.load %arg3[%c0_4, %c0_5] : memref<2x1xf32, #tpu.memory_space<vmem>>, vector<2x1xf32>
    %c0_6 = arith.constant 0 : index
    %c0_7 = arith.constant 0 : index
    %4 = vector.load %arg4[%c0_6, %c0_7] : memref<2x4xf32, #tpu.memory_space<vmem>>, vector<2x4xf32>
    %c0_8 = arith.constant 0 : index
    %c0_9 = arith.constant 0 : index
    %5 = vector.load %arg5[%c0_8, %c0_9] : memref<2x1xf32, #tpu.memory_space<vmem>>, vector<2x1xf32>
    %c0_10 = arith.constant 0 : index
    %c0_11 = arith.constant 0 : index
    %6 = vector.load %arg6[%c0_10, %c0_11] : memref<2x4xf32, #tpu.memory_space<vmem>>, vector<2x4xf32>
    %c0_12 = arith.constant 0 : index
    %c0_13 = arith.constant 0 : index
    %7 = vector.load %arg7[%c0_12, %c0_13] : memref<2x1xf32, #tpu.memory_space<vmem>>, vector<2x1xf32>
    %c0_14 = arith.constant 0 : index
    %c0_15 = arith.constant 0 : index
    %8 = vector.load %arg8[%c0_14, %c0_15] : memref<4x2xf32, #tpu.memory_space<vmem>>, vector<4x2xf32>
    %c0_16 = arith.constant 0 : index
    %c0_17 = arith.constant 0 : index
    %9 = vector.load %arg9[%c0_16, %c0_17] : memref<4x1xf32, #tpu.memory_space<vmem>>, vector<4x1xf32>
    %10 = vector.extract_strided_slice %2 {offsets = [0, 0], sizes = [2, 1], strides = [1, 1]} : vector<2x4xf32> to vector<2x1xf32>
    %11 = vector.extract_strided_slice %1 {offsets = [0, 0], sizes = [1, 256], strides = [1, 1]} : vector<4x256xf32> to vector<1x256xf32>
    %12 = vector.broadcast %10 : vector<2x1xf32> to vector<2x256xf32>
    %13 = vector.broadcast %11 : vector<1x256xf32> to vector<2x256xf32>
    %14 = arith.mulf %12, %13 : vector<2x256xf32>
    %15 = vector.extract_strided_slice %2 {offsets = [0, 1], sizes = [2, 1], strides = [1, 1]} : vector<2x4xf32> to vector<2x1xf32>
    %16 = vector.extract_strided_slice %1 {offsets = [1, 0], sizes = [1, 256], strides = [1, 1]} : vector<4x256xf32> to vector<1x256xf32>
    %17 = vector.broadcast %15 : vector<2x1xf32> to vector<2x256xf32>
    %18 = vector.broadcast %16 : vector<1x256xf32> to vector<2x256xf32>
    %19 = arith.mulf %17, %18 : vector<2x256xf32>
    %20 = arith.addf %14, %19 : vector<2x256xf32>
    %21 = vector.extract_strided_slice %2 {offsets = [0, 2], sizes = [2, 1], strides = [1, 1]} : vector<2x4xf32> to vector<2x1xf32>
    %22 = vector.extract_strided_slice %1 {offsets = [2, 0], sizes = [1, 256], strides = [1, 1]} : vector<4x256xf32> to vector<1x256xf32>
    %23 = vector.broadcast %21 : vector<2x1xf32> to vector<2x256xf32>
    %24 = vector.broadcast %22 : vector<1x256xf32> to vector<2x256xf32>
    %25 = arith.mulf %23, %24 : vector<2x256xf32>
    %26 = arith.addf %20, %25 : vector<2x256xf32>
    %27 = vector.extract_strided_slice %2 {offsets = [0, 3], sizes = [2, 1], strides = [1, 1]} : vector<2x4xf32> to vector<2x1xf32>
    %28 = vector.extract_strided_slice %1 {offsets = [3, 0], sizes = [1, 256], strides = [1, 1]} : vector<4x256xf32> to vector<1x256xf32>
    %29 = vector.broadcast %27 : vector<2x1xf32> to vector<2x256xf32>
    %30 = vector.broadcast %28 : vector<1x256xf32> to vector<2x256xf32>
    %31 = arith.mulf %29, %30 : vector<2x256xf32>
    %32 = arith.addf %26, %31 : vector<2x256xf32>
    %33 = vector.broadcast %3 : vector<2x1xf32> to vector<2x256xf32>
    %34 = arith.addf %32, %33 : vector<2x256xf32>
    %35 = vector.extract_strided_slice %4 {offsets = [0, 0], sizes = [2, 1], strides = [1, 1]} : vector<2x4xf32> to vector<2x1xf32>
    %36 = vector.extract_strided_slice %1 {offsets = [0, 0], sizes = [1, 256], strides = [1, 1]} : vector<4x256xf32> to vector<1x256xf32>
    %37 = vector.broadcast %35 : vector<2x1xf32> to vector<2x256xf32>
    %38 = vector.broadcast %36 : vector<1x256xf32> to vector<2x256xf32>
    %39 = arith.mulf %37, %38 : vector<2x256xf32>
    %40 = vector.extract_strided_slice %4 {offsets = [0, 1], sizes = [2, 1], strides = [1, 1]} : vector<2x4xf32> to vector<2x1xf32>
    %41 = vector.extract_strided_slice %1 {offsets = [1, 0], sizes = [1, 256], strides = [1, 1]} : vector<4x256xf32> to vector<1x256xf32>
    %42 = vector.broadcast %40 : vector<2x1xf32> to vector<2x256xf32>
    %43 = vector.broadcast %41 : vector<1x256xf32> to vector<2x256xf32>
    %44 = arith.mulf %42, %43 : vector<2x256xf32>
    %45 = arith.addf %39, %44 : vector<2x256xf32>
    %46 = vector.extract_strided_slice %4 {offsets = [0, 2], sizes = [2, 1], strides = [1, 1]} : vector<2x4xf32> to vector<2x1xf32>
    %47 = vector.extract_strided_slice %1 {offsets = [2, 0], sizes = [1, 256], strides = [1, 1]} : vector<4x256xf32> to vector<1x256xf32>
    %48 = vector.broadcast %46 : vector<2x1xf32> to vector<2x256xf32>
    %49 = vector.broadcast %47 : vector<1x256xf32> to vector<2x256xf32>
    %50 = arith.mulf %48, %49 : vector<2x256xf32>
    %51 = arith.addf %45, %50 : vector<2x256xf32>
    %52 = vector.extract_strided_slice %4 {offsets = [0, 3], sizes = [2, 1], strides = [1, 1]} : vector<2x4xf32> to vector<2x1xf32>
    %53 = vector.extract_strided_slice %1 {offsets = [3, 0], sizes = [1, 256], strides = [1, 1]} : vector<4x256xf32> to vector<1x256xf32>
    %54 = vector.broadcast %52 : vector<2x1xf32> to vector<2x256xf32>
    %55 = vector.broadcast %53 : vector<1x256xf32> to vector<2x256xf32>
    %56 = arith.mulf %54, %55 : vector<2x256xf32>
    %57 = arith.addf %51, %56 : vector<2x256xf32>
    %58 = vector.broadcast %5 : vector<2x1xf32> to vector<2x256xf32>
    %59 = arith.addf %57, %58 : vector<2x256xf32>
    %60 = vector.extract_strided_slice %6 {offsets = [0, 0], sizes = [2, 1], strides = [1, 1]} : vector<2x4xf32> to vector<2x1xf32>
    %61 = vector.extract_strided_slice %1 {offsets = [0, 0], sizes = [1, 256], strides = [1, 1]} : vector<4x256xf32> to vector<1x256xf32>
    %62 = vector.broadcast %60 : vector<2x1xf32> to vector<2x256xf32>
    %63 = vector.broadcast %61 : vector<1x256xf32> to vector<2x256xf32>
    %64 = arith.mulf %62, %63 : vector<2x256xf32>
    %65 = vector.extract_strided_slice %6 {offsets = [0, 1], sizes = [2, 1], strides = [1, 1]} : vector<2x4xf32> to vector<2x1xf32>
    %66 = vector.extract_strided_slice %1 {offsets = [1, 0], sizes = [1, 256], strides = [1, 1]} : vector<4x256xf32> to vector<1x256xf32>
    %67 = vector.broadcast %65 : vector<2x1xf32> to vector<2x256xf32>
    %68 = vector.broadcast %66 : vector<1x256xf32> to vector<2x256xf32>
    %69 = arith.mulf %67, %68 : vector<2x256xf32>
    %70 = arith.addf %64, %69 : vector<2x256xf32>
    %71 = vector.extract_strided_slice %6 {offsets = [0, 2], sizes = [2, 1], strides = [1, 1]} : vector<2x4xf32> to vector<2x1xf32>
    %72 = vector.extract_strided_slice %1 {offsets = [2, 0], sizes = [1, 256], strides = [1, 1]} : vector<4x256xf32> to vector<1x256xf32>
    %73 = vector.broadcast %71 : vector<2x1xf32> to vector<2x256xf32>
    %74 = vector.broadcast %72 : vector<1x256xf32> to vector<2x256xf32>
    %75 = arith.mulf %73, %74 : vector<2x256xf32>
    %76 = arith.addf %70, %75 : vector<2x256xf32>
    %77 = vector.extract_strided_slice %6 {offsets = [0, 3], sizes = [2, 1], strides = [1, 1]} : vector<2x4xf32> to vector<2x1xf32>
    %78 = vector.extract_strided_slice %1 {offsets = [3, 0], sizes = [1, 256], strides = [1, 1]} : vector<4x256xf32> to vector<1x256xf32>
    %79 = vector.broadcast %77 : vector<2x1xf32> to vector<2x256xf32>
    %80 = vector.broadcast %78 : vector<1x256xf32> to vector<2x256xf32>
    %81 = arith.mulf %79, %80 : vector<2x256xf32>
    %82 = arith.addf %76, %81 : vector<2x256xf32>
    %83 = vector.broadcast %7 : vector<2x1xf32> to vector<2x256xf32>
    %84 = arith.addf %82, %83 : vector<2x256xf32>
    %85 = vector.broadcast %9 : vector<4x1xf32> to vector<4x256xf32>
    %86 = arith.addf %1, %85 : vector<4x256xf32>
    %87 = vector.extract_strided_slice %34 {offsets = [0, 0], sizes = [1, 256], strides = [1, 1]} : vector<2x256xf32> to vector<1x256xf32>
    %88 = vector.extract_strided_slice %59 {offsets = [0, 0], sizes = [1, 256], strides = [1, 1]} : vector<2x256xf32> to vector<1x256xf32>
    %89 = vector.extract_strided_slice %84 {offsets = [0, 0], sizes = [1, 256], strides = [1, 1]} : vector<2x256xf32> to vector<1x256xf32>
    %cst = arith.constant dense<0xFF800000> : vector<1xf32>
    %90 = vector.multi_reduction <maximumf>, %87, %cst [1] : vector<1x256xf32> to vector<1xf32>
    %91 = vector.shape_cast %90 : vector<1xf32> to vector<1x1xf32>
    %92 = vector.broadcast %91 : vector<1x1xf32> to vector<1x256xf32>
    %93 = arith.subf %87, %92 : vector<1x256xf32>
    %94 = math.exp %93 : vector<1x256xf32>
    %cst_18 = arith.constant dense<0.000000e+00> : vector<1xf32>
    %95 = vector.multi_reduction <add>, %94, %cst_18 [1] : vector<1x256xf32> to vector<1xf32>
    %96 = vector.shape_cast %95 : vector<1xf32> to vector<1x1xf32>
    %97 = vector.broadcast %96 : vector<1x1xf32> to vector<1x256xf32>
    %98 = arith.divf %94, %97 : vector<1x256xf32>
    %cst_19 = arith.constant dense<0xFF800000> : vector<256xf32>
    %99 = vector.multi_reduction <maximumf>, %88, %cst_19 [0] : vector<1x256xf32> to vector<256xf32>
    %100 = vector.shape_cast %99 : vector<256xf32> to vector<1x256xf32>
    %101 = arith.subf %88, %100 : vector<1x256xf32>
    %102 = math.exp %101 : vector<1x256xf32>
    %cst_20 = arith.constant dense<0.000000e+00> : vector<256xf32>
    %103 = vector.multi_reduction <add>, %102, %cst_20 [0] : vector<1x256xf32> to vector<256xf32>
    %104 = vector.shape_cast %103 : vector<256xf32> to vector<1x256xf32>
    %105 = arith.divf %102, %104 : vector<1x256xf32>
    %106 = arith.mulf %98, %89 : vector<1x256xf32>
    %cst_21 = arith.constant dense<0.000000e+00> : vector<1xf32>
    %107 = vector.multi_reduction <add>, %106, %cst_21 [1] : vector<1x256xf32> to vector<1xf32>
    %108 = vector.shape_cast %107 : vector<1xf32> to vector<1x1xf32>
    %109 = vector.broadcast %108 : vector<1x1xf32> to vector<1x256xf32>
    %110 = arith.mulf %109, %105 : vector<1x256xf32>
    %cst_22 = arith.constant dense<0.000000e+00> : vector<256xf32>
    %111 = vector.multi_reduction <add>, %110, %cst_22 [0] : vector<1x256xf32> to vector<256xf32>
    %112 = vector.shape_cast %111 : vector<256xf32> to vector<1x256xf32>
    %113 = vector.extract_strided_slice %8 {offsets = [0, 0], sizes = [4, 1], strides = [1, 1]} : vector<4x2xf32> to vector<4x1xf32>
    %114 = vector.broadcast %113 : vector<4x1xf32> to vector<4x256xf32>
    %115 = vector.broadcast %112 : vector<1x256xf32> to vector<4x256xf32>
    %116 = arith.mulf %114, %115 : vector<4x256xf32>
    %117 = arith.addf %86, %116 : vector<4x256xf32>
    %118 = vector.extract_strided_slice %34 {offsets = [1, 0], sizes = [1, 256], strides = [1, 1]} : vector<2x256xf32> to vector<1x256xf32>
    %119 = vector.extract_strided_slice %59 {offsets = [1, 0], sizes = [1, 256], strides = [1, 1]} : vector<2x256xf32> to vector<1x256xf32>
    %120 = vector.extract_strided_slice %84 {offsets = [1, 0], sizes = [1, 256], strides = [1, 1]} : vector<2x256xf32> to vector<1x256xf32>
    %cst_23 = arith.constant dense<0xFF800000> : vector<1xf32>
    %121 = vector.multi_reduction <maximumf>, %118, %cst_23 [1] : vector<1x256xf32> to vector<1xf32>
    %122 = vector.shape_cast %121 : vector<1xf32> to vector<1x1xf32>
    %123 = vector.broadcast %122 : vector<1x1xf32> to vector<1x256xf32>
    %124 = arith.subf %118, %123 : vector<1x256xf32>
    %125 = math.exp %124 : vector<1x256xf32>
    %cst_24 = arith.constant dense<0.000000e+00> : vector<1xf32>
    %126 = vector.multi_reduction <add>, %125, %cst_24 [1] : vector<1x256xf32> to vector<1xf32>
    %127 = vector.shape_cast %126 : vector<1xf32> to vector<1x1xf32>
    %128 = vector.broadcast %127 : vector<1x1xf32> to vector<1x256xf32>
    %129 = arith.divf %125, %128 : vector<1x256xf32>
    %cst_25 = arith.constant dense<0xFF800000> : vector<256xf32>
    %130 = vector.multi_reduction <maximumf>, %119, %cst_25 [0] : vector<1x256xf32> to vector<256xf32>
    %131 = vector.shape_cast %130 : vector<256xf32> to vector<1x256xf32>
    %132 = arith.subf %119, %131 : vector<1x256xf32>
    %133 = math.exp %132 : vector<1x256xf32>
    %cst_26 = arith.constant dense<0.000000e+00> : vector<256xf32>
    %134 = vector.multi_reduction <add>, %133, %cst_26 [0] : vector<1x256xf32> to vector<256xf32>
    %135 = vector.shape_cast %134 : vector<256xf32> to vector<1x256xf32>
    %136 = arith.divf %133, %135 : vector<1x256xf32>
    %137 = arith.mulf %129, %120 : vector<1x256xf32>
    %cst_27 = arith.constant dense<0.000000e+00> : vector<1xf32>
    %138 = vector.multi_reduction <add>, %137, %cst_27 [1] : vector<1x256xf32> to vector<1xf32>
    %139 = vector.shape_cast %138 : vector<1xf32> to vector<1x1xf32>
    %140 = vector.broadcast %139 : vector<1x1xf32> to vector<1x256xf32>
    %141 = arith.mulf %140, %136 : vector<1x256xf32>
    %cst_28 = arith.constant dense<0.000000e+00> : vector<256xf32>
    %142 = vector.multi_reduction <add>, %141, %cst_28 [0] : vector<1x256xf32> to vector<256xf32>
    %143 = vector.shape_cast %142 : vector<256xf32> to vector<1x256xf32>
    %144 = vector.extract_strided_slice %8 {offsets = [0, 1], sizes = [4, 1], strides = [1, 1]} : vector<4x2xf32> to vector<4x1xf32>
    %145 = vector.broadcast %144 : vector<4x1xf32> to vector<4x256xf32>
    %146 = vector.broadcast %143 : vector<1x256xf32> to vector<4x256xf32>
    %147 = arith.mulf %145, %146 : vector<4x256xf32>
    %148 = arith.addf %117, %147 : vector<4x256xf32>
    %c0_29 = arith.constant 0 : index
    %c0_30 = arith.constant 0 : index
    %c0_31 = arith.constant 0 : index
    %149 = vector.load %arg10[%c0_29, %c0_30, %c0_31] : memref<1x4x256xf32, #tpu.memory_space<vmem>>, vector<1x4x256xf32>
    %150 = vector.shape_cast %149 : vector<1x4x256xf32> to vector<4x256xf32>
    %151 = vector.shape_cast %148 : vector<4x256xf32> to vector<1x4x256xf32>
    tpu.vector_store %arg10[%c0_29, %c0_30, %c0_31], %151 {strides = array<i32>} : memref<1x4x256xf32, #tpu.memory_space<vmem>>, vector<1x4x256xf32>,
    return
  }
  func.func @transform_0(%arg0: i32) -> (i32, i32, i32) {
    %c0_i32 = arith.constant 0 : i32
    %c0_i32_0 = arith.constant 0 : i32
    %c0_i32_1 = arith.constant 0 : i32
    return %arg0, %c0_i32, %c0_i32_0 : i32, i32, i32
  }
  func.func @transform_1(%arg0: i32) -> (i32, i32) {
    %c0_i32 = arith.constant 0 : i32
    %c0_i32_0 = arith.constant 0 : i32
    %c0_i32_1 = arith.constant 0 : i32
    return %c0_i32, %c0_i32_0 : i32, i32
  }
  func.func @transform_2(%arg0: i32) -> (i32, i32) {
    %c0_i32 = arith.constant 0 : i32
    %c0_i32_0 = arith.constant 0 : i32
    %c0_i32_1 = arith.constant 0 : i32
    return %c0_i32, %c0_i32_0 : i32, i32
  }
  func.func @transform_3(%arg0: i32) -> (i32, i32) {
    %c0_i32 = arith.constant 0 : i32
    %c0_i32_0 = arith.constant 0 : i32
    %c0_i32_1 = arith.constant 0 : i32
    return %c0_i32, %c0_i32_0 : i32, i32
  }
  func.func @transform_4(%arg0: i32) -> (i32, i32) {
    %c0_i32 = arith.constant 0 : i32
    %c0_i32_0 = arith.constant 0 : i32
    %c0_i32_1 = arith.constant 0 : i32
    return %c0_i32, %c0_i32_0 : i32, i32
  }
  func.func @transform_5(%arg0: i32) -> (i32, i32) {
    %c0_i32 = arith.constant 0 : i32
    %c0_i32_0 = arith.constant 0 : i32
    %c0_i32_1 = arith.constant 0 : i32
    return %c0_i32, %c0_i32_0 : i32, i32
  }
  func.func @transform_6(%arg0: i32) -> (i32, i32) {
    %c0_i32 = arith.constant 0 : i32
    %c0_i32_0 = arith.constant 0 : i32
    %c0_i32_1 = arith.constant 0 : i32
    return %c0_i32, %c0_i32_0 : i32, i32
  }
  func.func @transform_7(%arg0: i32) -> (i32, i32) {
    %c0_i32 = arith.constant 0 : i32
    %c0_i32_0 = arith.constant 0 : i32
    %c0_i32_1 = arith.constant 0 : i32
    return %c0_i32, %c0_i32_0 : i32, i32
  }
  func.func @transform_8(%arg0: i32) -> (i32, i32) {
    %c0_i32 = arith.constant 0 : i32
    %c0_i32_0 = arith.constant 0 : i32
    %c0_i32_1 = arith.constant 0 : i32
    return %c0_i32, %c0_i32_0 : i32, i32
  }
  func.func @transform_9(%arg0: i32) -> (i32, i32, i32) {
    %c0_i32 = arith.constant 0 : i32
    %c0_i32_0 = arith.constant 0 : i32
    %c0_i32_1 = arith.constant 0 : i32
    return %arg0, %c0_i32, %c0_i32_0 : i32, i32, i32
  }
}

</mosaic_0001>

<bundles_post_ra>
// kernel: tpu_custom_call.1
= control target key start
LH: loop header
LB: loop body
LE: loop exit
PB: predicated region body
PF: predicated region fallthrough
CT: control target
= control target key end

     0   :  { %14 = vsyncpa [#allocation3], 0  ;;  %s1174_s0 = inlined_call_operand.vmem [shape: f32[2,4,256], index: 0, kind: input, shape index: {}]   ;;  %s1175_s1 = inlined_call_operand.vmem [shape: f32[2,4], index: 1, kind: input, shape index: {}]   ;;  %s1176_s2 = inlined_call_operand.vmem [shape: f32[2,1], index: 2, kind: input, shape index: {}]   ;;  %s1177_s3 = inlined_call_operand.vmem [shape: f32[2,4], index: 3, kind: input, shape index: {}]   ;;  %s1178_s4 = inlined_call_operand.vmem [shape: f32[2,1], index: 4, kind: input, shape index: {}]   ;;  %s1179_s5 = inlined_call_operand.vmem [shape: f32[2,4], index: 5, kind: input, shape index: {}]   ;;  %s1180_s6 = inlined_call_operand.vmem [shape: f32[2,1], index: 6, kind: input, shape index: {}]   ;;  %s1181_s7 = inlined_call_operand.vmem [shape: f32[4,2], index: 7, kind: input, shape index: {}]   ;;  %s1182_s8 = inlined_call_operand.vmem [shape: f32[4,1], index: 8, kind: input, shape index: {}]   ;;  %s1183_s9 = inlined_call_operand.hbm [shape: f32[2,4,256], index: 9, kind: output, shape index: {}]  }
   0x1   :  { %16 = vsyncpa [#allocation3 + $0x1], 0  ;;  %s942_s30 = smov 0   ;;  %s944_s10 = smov 0  }
   0x2   :  { %s946_s11 = smov 0   ;;  %s948_s12 = smov 0  }
   0x3 LB: > { %s963_s13 = sadd.s32 4294967295, %s884_s12   ;;  %s728_s14 = sadd.s32 4294967294, %s884_s12   ;;  %s884_s12 = sphi %s948_s12, %s1189_s12   ;;  %s880_s11 = sphi %s946_s11, %s1188_s11   ;;  %s876_s10 = sphi %s944_s10, %s1187_s10   ;;  %s872_s30 = sphi %s942_s30, %s1186_s30  }
   0x4   : > { %s967_s15 = sadd.s32 1, %s884_s12   ;;  %s223_s16 = sadd.s32 1, %s880_s11 }
   0x5   : > { %s220_s17 = ssub.s32 %s884_s12, %s967_s15  ;;  %p233_p0 = scmp.ne.s32.totalorder %s880_s11, %s876_s10 }
   0x6   : > { %p221_p1 = scmp.eq.s32.totalorder %s220_s17, 0  ;;  %p234_p2 = scmp.eq.s32.totalorder %s963_s13, 1 }
   0x7   : > { %p239_p3 = scmp.ne.s32.totalorder %s876_s10, %s872_s30  ;;  %p240_p4 = scmp.eq.s32.totalorder %s728_s14, 1 }
   0x8   : > { %s978_s18 = scalar_select %p221_p1, %s880_s11, %s223_s16  }
   0x9   : > { %p980_p5 = por %p234_p2, %p233_p0  ;;  %p984_p6 = por %p240_p4, %p239_p3 }
   0xa   : > { %p731_p7 = scmp.ge.s32.totalorder %s884_s12, 1  ;;  %p290_p8 = scmp.lt.s32.totalorder %s884_s12, 3 }
   0xc   : > { %p291_p9 = pnand %p731_p7, %p290_p8 }
   0xd   : > { %v332_v0 = vld [vmem:[%s1175_s1] sm:$0x3] (!%p291_p9)  ;;  %v886_v1 = vmov (!%p291_p9), 0   ;;  %v887_v2 = vmov (!%p291_p9), 2   ;;  %v888_v3 = vmov (!%p291_p9), 1   ;;  %v889_v4 = vmov (!%p291_p9), 3  }
   0xe   : > { %294 = sbr.rel (%p291_p9) target bundleno = 656 (0x290), region = 56  ;;  %786 = vset.pattern.permute.xlu0 (!%p291_p9), %v886_v1  ;;  %788 = vset.pattern.permute.xlu1 (!%p291_p9), %v887_v2  ;;  %v333_v5 = vld [vmem:[%s1176_s2] sm:$0x3] (!%p291_p9)  ;;  %p326_p10 = scmp.lt.s32.totalorder (!%p291_p9), %s963_s13, 1  ;;  %v346_v6 = vlaneseq (!%p291_p9)  ;;  %vm603_vm0 = vcmask (!%p291_p9), 1041409   ;;  %vm540_vm1 = vcmask (!%p291_p9), 1040384  }
   0xf   : > { %342 = vperm.xlu0 (!%p291_p9), %786, %v332_v0   ;;  %393 = vperm.xlu1 (!%p291_p9), %788, %v332_v0   ;;  %v336_v60 = vld [vmem:[%s1179_s5] sm:$0x3] (!%p291_p9)  ;;  %s323_s14 = sand.u32 (!%p291_p9), 1, %s876_s10   ;;  %s741_s17 = sshll.u32 (!%p291_p9), %s963_s13, 7 }
  0x10   : > { %v1003_v7 = vshrl.u32 (!%p291_p9), %v346_v6, 7  ;;  %v337_v61 = vld [vmem:[%s1180_s6] sm:$0x3] (!%p291_p9)  ;;  %s732_s16 = sshll.u32 (!%p291_p9), %s323_s14, 3 }
  0x11   : > { %v334_v62 = vld [vmem:[%s1177_s3] sm:$0x3] (!%p291_p9)  ;;  %s325_s21 = scalar_lea.vmem (!%p291_p9), [#allocation2], %s732_s16 }
  0x12   : > { %v1009_v8 = vsub.s32 (!%p291_p9), 0, %v1003_v7  ;;  %v352_v9 = vsub.s32 (!%p291_p9), 4, %v1003_v7  ;;  %v1013_v10 = vsub.s32 (!%p291_p9), 1, %v1003_v7  ;;  %v376_v11 = vsub.s32 (!%p291_p9), 5, %v1003_v7  ;;  %v335_v63 = vld [vmem:[%s1178_s4] sm:$0x3] (!%p291_p9) }
  0x13   : > { %787 = vset.pattern.permute.xlu0 (!%p291_p9), %v888_v3  ;;  %789 = vset.pattern.permute.xlu1 (!%p291_p9), %v889_v4  ;;  %v398_v13 = vsub.s32 (!%p291_p9), 2, %v1003_v7  ;;  %v402_v14 = vsub.s32 (!%p291_p9), 6, %v1003_v7  ;;  %v424_v15 = vsub.s32 (!%p291_p9), 3, %v1003_v7  ;;  %v428_v16 = vsub.s32 (!%p291_p9), 7, %v1003_v7  ;;  %s669_s22 = sshll.u32 (!%p291_p9), %s325_s21, 4  ;;  %s1134_s22 = int_to_ptr.vmem [resolvable:$true] %s669_s22 }
  0x14   : > { %367 = vperm.xlu0 (!%p291_p9), %787, %v332_v0   ;;  %419 = vperm.xlu1 (!%p291_p9), %789, %v332_v0   ;;  %v1087_v0 = vld [vmem:[%s1181_s7] sm:$0xf] (!%p291_p9)  ;;  %s822_s27 = scalar_lea.vmem (!%p291_p9), %s1134_s22, 128 }
  0x15   : > { %s327_s25 = scalar_select %p326_p10, %s963_s13, 1 }
  0x16   : > { %p823_p11 = scmp.ne.s32.totalorder %s1134_s22, %s822_s27  ;;  %s891_s13 = smov [#allocation2]  }
  0x17   : > { %s740_s26 = sshll.u32 %s327_s25, 3  ;;  %s1132_s25 = scalar_lea.hbm %s1183_s9, %s741_s17 }
  0x18   : > { %790 = vset.pattern.permute.xlu1 %v886_v1  ;;  %s330_s29 = scalar_lea.vmem %s1174_s0, %s740_s26  ;;  %s655_s26 = scalar_lea.sflag [#allocation3], %s323_s14 }
  0x19   : > { %446 = vperm.xlu1 %790, %v333_v5   ;;  %v1016_v12 = vld [vmem:[%s330_s29] sm:$0xff]  ;;  %p824_p12 = pnand %p823_p11, %p980_p5  ;;  %s826_s28 = sshll.u32 %s891_s13, 4  ;;  %s827_s28 = int_to_ptr.vmem [resolvable:$false] %s826_s28 }
  0x1a   : > { %v349_v17 = vrot.slane %v1016_v12, %v1009_v8  ;;  %v353_v18 = vrot.slane %v1016_v12, %v352_v9  ;;  %v373_v19 = vrot.slane %v1016_v12, %v1013_v10  ;;  %v377_v20 = vrot.slane %v1016_v12, %v376_v11  ;;  %s828_s29 = scalar_lea.vmem %s827_s28, 256  ;;  %p829_p0 = scmp.lt.s32.totalorder %s1134_s22, %s827_s28 }
  0x1b   : > { %v399_v21 = vrot.slane %v1016_v12, %v398_v13  ;;  %v403_v22 = vrot.slane %v1016_v12, %v402_v14  ;;  %v425_v25 = vrot.slane %v1016_v12, %v424_v15  ;;  %v429_v26 = vrot.slane %v1016_v12, %v428_v16  ;;  %p825_p13 = pneg %p824_p12  ;;  %p830_p1 = scmp.lt.s32.totalorder %s828_s29, %s822_s27 }
  0x1c   : > { %v1033_v27 = vrot.slane %v349_v17, %v1009_v8  ;;  %v1036_v28 = vrot.slane %v353_v18, %v1009_v8  ;;  %v1039_v29 = vrot.slane %v373_v19, %v1013_v10  ;;  %v1042_v30 = vrot.slane %v377_v20, %v1013_v10 }
  0x1d   : > { %v1044_v31 = vrot.slane %v399_v21, %v398_v13  ;;  %v1046_v32 = vrot.slane %v403_v22, %v398_v13  ;;  %v1048_v33 = vrot.slane %v425_v25, %v424_v15  ;;  %v1050_v34 = vrot.slane %v429_v26, %v424_v15  ;;  %p831_p2 = por %p830_p1, %p829_p0 }
  0x1f   : > { %p832_p3 = pnand %p831_p2, %p825_p13 }
  0x8e   : > { %v343_v23 = vpop.permute.xlu0 %342  ;;  %v394_v24 = vpop.permute.xlu1 %393 }
  0x8f   : > { %v364_v37 = vmul.f32 %v1033_v27, %v343_v23  ;;  %v365_v38 = vmul.f32 %v1036_v28, %v343_v23  ;;  %v414_v41 = vmul.f32 %v1044_v31, %v394_v24  ;;  %v415_v42 = vmul.f32 %v1046_v32, %v394_v24 }
  0x93   : > { %v368_v35 = vpop.permute.xlu0 %367  ;;  %v420_v36 = vpop.permute.xlu1 %419 }
  0x94   : > { %v388_v39 = vmul.f32 %v1039_v29, %v368_v35  ;;  %v389_v40 = vmul.f32 %v1042_v30, %v368_v35  ;;  %v440_v45 = vmul.f32 %v1048_v33, %v420_v36  ;;  %v441_v46 = vmul.f32 %v1050_v34, %v420_v36 }
  0x96   : > { %v390_v43 = vadd.f32 %v388_v39, %v364_v37  ;;  %v391_v44 = vadd.f32 %v389_v40, %v365_v38 }
  0x98   : > { %v416_v47 = vadd.f32 %v414_v41, %v390_v43  ;;  %v417_v48 = vadd.f32 %v415_v42, %v391_v44  ;;  %v447_v49 = vpop.permute.xlu1 %446 }
  0x9a   : > { %v442_v50 = vadd.f32 %v440_v45, %v416_v47  ;;  %v443_v51 = vadd.f32 %v441_v46, %v417_v48 }
  0x9c   : > { %v449_v52 = vadd.f32 %v447_v49, %v442_v50  ;;  %v450_v53 = vadd.f32 %v447_v49, %v443_v51 }
  0x9e   : > { %v604_v54 = vsel %vm603_vm0, %v449_v52, -inf  ;;  %v605_v55 = vsel %vm603_vm0, %v450_v53, -inf  ;;  %v541_v56 = vsel %vm540_vm1, %v449_v52, -inf  ;;  %v542_v57 = vsel %vm540_vm1, %v450_v53, -inf }
  0x9f   : > { %v606_v58 = vmax.f32 %v604_v54, %v605_v55  ;;  %v543_v59 = vmax.f32 %v541_v56, %v542_v57 }
  0xa1   : > { %607 = vmax.xlane.f32.xlu1 %v606_v58  ;;  %544 = vmax.xlane.f32.xlu0 %v543_v59 }
  0xb2   : > { %491 = vperm.xlu1 %790, %v336_v60  }
  0xb6   : > { %791 = vset.pattern.permute.xlu1 %v887_v2 }
  0xb7   : > { %505 = vperm.xlu1 %791, %v336_v60   ;;  %497 = vperm.xlu0 %787, %v336_v60  }
  0xbb   : > { %792 = vset.pattern.permute.xlu1 %v889_v4  ;;  %793 = vset.pattern.permute.xlu0 %v886_v1 }
  0xbc   : > { %513 = vperm.xlu1 %792, %v336_v60   ;;  %522 = vperm.xlu0 %793, %v337_v61  }
  0xc0   : > { %794 = vset.pattern.permute.xlu1 %v886_v1  ;;  %796 = vset.pattern.permute.xlu0 %v887_v2 }
  0xc1   : > { %453 = vperm.xlu1 %794, %v334_v62  }
  0xc5   : > { %795 = vset.pattern.permute.xlu1 %v888_v3 }
  0xc6   : > { %459 = vperm.xlu1 %795, %v334_v62  }
  0xca   : > { %797 = vset.pattern.permute.xlu1 %v889_v4 }
  0xcb   : > { %475 = vperm.xlu1 %797, %v334_v62  }
  0xcf   : > { %798 = vset.pattern.permute.xlu1 %v886_v1 }
  0xd0   : > { %484 = vperm.xlu1 %798, %v335_v63  }
  0xd4   : > { %585 = vperm.xlu1 %798, %v1087_v0  }
  0xd8   : > { %800 = vset.pattern.permute.xlu1 %v888_v3 }
 0x12e   : > { %v608_v2 = vpop.xlane.xlu1 %607  ;;  %v545_v5 = vpop.xlane.xlu0 %544 }
 0x12f   : > { %v609_v4 = vsub.f32 %v449_v52, %v608_v2  ;;  %v610_v6 = vsub.f32 %v450_v53, %v608_v2  ;;  %v546_v9 = vsub.f32 %v449_v52, %v545_v5  ;;  %v547_v11 = vsub.f32 %v450_v53, %v545_v5 }
 0x131   : > { %v611_v13 = vmul.f32 1.442695, %v609_v4  ;;  %v613_v14 = vmul.f32 1.442695, %v610_v6  ;;  %v548_v15 = vmul.f32 1.442695, %v546_v9 }
 0x132   : > { %v550_v16 = vmul.f32 1.442695, %v547_v11  ;;  %v492_v35 = vpop.permute.xlu1 %491 }
 0x133   : > { %802 = vpow2.f32 %v611_v13  ;;  %v494_v41 = vmul.f32 %v492_v35, %v1033_v27  ;;  %v495_v42 = vmul.f32 %v492_v35, %v1036_v28 }
 0x134   : > { %804 = vpow2.f32 %v613_v14 }
 0x135   : > { %806 = vpow2.f32 %v548_v15 }
 0x136   : > { %808 = vpow2.f32 %v550_v16  ;;  %v498_v36 = vpop.permute.xlu0 %497  ;;  %v506_v37 = vpop.permute.xlu1 %505  ;;  %v339_v16 = vld [vmem:[%s1182_s8] sm:$0xf] }
 0x137   : > { %v500_v38 = vmul.f32 %v498_v36, %v1039_v29  ;;  %v501_v39 = vmul.f32 %v498_v36, %v1042_v30  ;;  %v508_v45 = vmul.f32 %v506_v37, %v1044_v31  ;;  %v509_v46 = vmul.f32 %v506_v37, %v1046_v32 }
 0x139   : > { %v502_v43 = vadd.f32 %v500_v38, %v494_v41  ;;  %v503_v44 = vadd.f32 %v501_v39, %v495_v42 }
 0x13b   : > { %v523_v40 = vpop.permute.xlu0 %522  ;;  %v510_v48 = vadd.f32 %v508_v45, %v502_v43  ;;  %v511_v49 = vadd.f32 %v509_v46, %v503_v44  ;;  %v890_v45 = vmov 839922192  }
 0x13d   : > { %v803_v17 = vpop.eup %802 }
 0x13e   : > { %v805_v18 = vpop.eup %804  ;;  %v615_v24 = vsel %vm603_vm0, %v803_v17, 0.0 }
 0x13f   : > { %v807_v19 = vpop.eup %806  ;;  %v616_v25 = vsel %vm603_vm0, %v805_v18, 0.0 }
 0x140   : > { %v809_v20 = vpop.eup %808  ;;  %v552_v21 = vsel %vm540_vm1, %v807_v19, 0.0  ;;  %v617_v26 = vadd.f32 %v616_v25, %v615_v24 }
 0x141   : > { %v553_v22 = vsel %vm540_vm1, %v809_v20, 0.0 }
 0x142   : > { %v554_v23 = vadd.f32 %v553_v22, %v552_v21 }
 0x144   : > { %555 = vadd.xlane.f32.xlu0 %v554_v23 }
 0x148   : > { %618 = vadd.xlane.f32.xlu0 %v617_v26 }
 0x15e   : > { %467 = vperm.xlu0 %796, %v334_v62  }
 0x162   : > { %799 = vset.pattern.permute.xlu0 %v886_v1  ;;  %v514_v1 = vpop.permute.xlu1 %513 }
 0x163   : > { %v516_v50 = vmul.f32 %v514_v1, %v1048_v33  ;;  %v517_v51 = vmul.f32 %v514_v1, %v1050_v34 }
 0x165   : > { %v518_v53 = vadd.f32 %v516_v50, %v510_v48  ;;  %v519_v54 = vadd.f32 %v517_v51, %v511_v49 }
 0x167   : > { %v525_v56 = vadd.f32 %v523_v40, %v518_v53  ;;  %v526_v57 = vadd.f32 %v523_v40, %v519_v54 }
 0x1d1   : > { %v556_v47 = vpop.xlane.xlu0 %555 }
 0x1d2   : > { %810 = vrcp.f32 %v556_v47 }
 0x1d5   : > { %v619_v52 = vpop.xlane.xlu0 %618 }
 0x1d6   : > { %812 = vrcp.f32 %v619_v52 }
 0x1dc   : > { %v811_v55 = vpop.eup %810 }
 0x1dd   : > { %v558_v58 = vmul.f32 %v811_v55, %v807_v19  ;;  %v559_v59 = vmul.f32 %v811_v55, %v809_v20  ;;  %v468_v23 = vpop.permute.xlu0 %467 }
 0x1de   : > { %v470_v25 = vmul.f32 %v468_v23, %v1044_v31 }
 0x1df   : > { %v572_v60 = vmul.f32 %v558_v58, %v525_v56  ;;  %v573_v61 = vmul.f32 %v559_v59, %v526_v57 }
 0x1e0   : > { %v813_v62 = vpop.eup %812 }
 0x1e1   : > { %v574_v63 = vsel %vm540_vm1, %v572_v60, 0.0  ;;  %v575_v2 = vsel %vm540_vm1, %v573_v61, 0.0  ;;  %v621_v5 = vmul.f32 %v813_v62, %v803_v17  ;;  %v622_v4 = vmul.f32 %v813_v62, %v805_v18  ;;  %v454_v17 = vpop.permute.xlu1 %453 }
 0x1e2   : > { %v576_v6 = vadd.f32 %v575_v2, %v574_v63  ;;  %v456_v19 = vmul.f32 %v454_v17, %v1033_v27  ;;  %v457_v21 = vmul.f32 %v454_v17, %v1036_v28 }
 0x1e3   : > { %v623_v9 = vmul.f32 %v621_v5, %v525_v56  ;;  %v624_v11 = vmul.f32 %v622_v4, %v526_v57 }
 0x1e4   : > { %577 = vadd.xlane.f32.xlu0 %v576_v6 }
 0x1e5   : > { %v625_v13 = vsel %vm603_vm0, %v623_v9, 0.0  ;;  %v626_v14 = vsel %vm603_vm0, %v624_v11, 0.0  ;;  %v460_v18 = vpop.permute.xlu1 %459 }
 0x1e6   : > { %v627_v15 = vadd.f32 %v626_v14, %v625_v13  ;;  %v462_v20 = vmul.f32 %v460_v18, %v1039_v29  ;;  %v463_v22 = vmul.f32 %v460_v18, %v1042_v30 }
 0x1e8   : > { %628 = vadd.xlane.f32.xlu1 %v627_v15  ;;  %v464_v24 = vadd.f32 %v462_v20, %v456_v19  ;;  %v465_v26 = vadd.f32 %v463_v22, %v457_v21 }
 0x1e9   : > { %v476_v35 = vpop.permute.xlu1 %475 }
 0x1ea   : > { %v472_v36 = vadd.f32 %v470_v25, %v464_v24  ;;  %v479_v27 = vmul.f32 %v476_v35, %v1050_v34  ;;  %v532_v34 = vunpack.c.l.s4 %v890_v45 }
 0x1ec   : > { %v533_v51 = vunpack.c.0.s8 %v532_v34 }
 0x1ed   : > { %v485_v29 = vpop.permute.xlu1 %484 }
 0x1ee   : > { %v536_v57 = vsub.s32 %v533_v51, %v1003_v7 }
 0x1f1   : > { %v586_v1 = vpop.permute.xlu1 %585 }
 0x1f9   : > { %635 = vperm.xlu1 %800, %v1087_v0   ;;  %v471_v0 = vmul.f32 %v468_v23, %v1046_v32 }
 0x1fa   : > { %529 = vperm.xlu0 %799, %v339_v16  }
 0x1fb   : > { %v473_v37 = vadd.f32 %v471_v0, %v465_v26 }
 0x1fd   : > { %v481_v39 = vadd.f32 %v479_v27, %v473_v37 }
 0x1fe   : > { %801 = vset.pattern.permute.xlu0 %v888_v3  ;;  %v478_v3 = vmul.f32 %v476_v35, %v1048_v33 }
 0x1ff   : > { %v488_v40 = vadd.f32 %v485_v29, %v481_v39 }
 0x200   : > { %v480_v38 = vadd.f32 %v478_v3, %v472_v36 }
 0x201   : > { %v561_v41 = vsub.f32 %v488_v40, %v488_v40 }
 0x202   : > { %v487_v28 = vadd.f32 %v485_v29, %v480_v38 }
 0x203   : > { %v564_v43 = vmul.f32 1.442695, %v561_v41 }
 0x204   : > { %v560_v30 = vsub.f32 %v487_v28, %v487_v28 }
 0x206   : > { %v562_v42 = vmul.f32 1.442695, %v560_v30 }
 0x208   : > { %814 = vpow2.f32 %v562_v42 }
 0x209   : > { %816 = vpow2.f32 %v564_v43 }
 0x212   : > { %v815_v31 = vpop.eup %814 }
 0x213   : > { %v817_v32 = vpop.eup %816  ;;  %818 = vrcp.f32 %v815_v31 }
 0x214   : > { %820 = vrcp.f32 %v817_v32 }
 0x21d   : > { %v819_v33 = vpop.eup %818 }
 0x21e   : > { %v821_v44 = vpop.eup %820  ;;  %v569_v46 = vmul.f32 %v819_v33, %v815_v31 }
 0x21f   : > { %v571_v47 = vmul.f32 %v821_v44, %v817_v32 }
 0x271   : > { %v578_v48 = vpop.xlane.xlu0 %577 }
 0x272   : > { %v579_v49 = vmul.f32 %v578_v48, %v569_v46  ;;  %v580_v50 = vmul.f32 %v578_v48, %v571_v47 }
 0x274   : > { %v591_v52 = vrot.slane %v579_v49, %v1009_v8  ;;  %v595_v53 = vrot.slane %v580_v50, %v1009_v8 }
 0x275   : > { %v629_v54 = vpop.xlane.xlu1 %628 }
 0x276   : > { %v630_v55 = vmul.f32 %v629_v54, %v569_v46  ;;  %v631_v56 = vmul.f32 %v629_v54, %v571_v47  ;;  %v596_v58 = vmul.f32 %v591_v52, %v586_v1  ;;  %v597_v59 = vmul.f32 %v595_v53, %v586_v1 }
 0x278   : > { %v641_v60 = vrot.slane %v630_v55, %v1013_v10  ;;  %v645_v61 = vrot.slane %v631_v56, %v1013_v10  ;;  %v600_v4 = vcombine.low %v596_v58, %v597_v59 }
 0x279   : > { %v636_v62 = vpop.permute.xlu1 %635  ;;  %v530_v63 = vpop.permute.xlu0 %529 }
 0x27a   : > { %v646_v2 = vmul.f32 %v641_v60, %v636_v62  ;;  %v647_v5 = vmul.f32 %v645_v61, %v636_v62  ;;  %v537_v8 = vrot.slane %v530_v63, %v536_v57 }
 0x27c   : > { %v539_v6 = vadd.f32 %v537_v8, %v1016_v12  ;;  %v650_v7 = vcombine.low %v646_v2, %v647_v5 }
 0x27e   : > { %v602_v9 = vadd.f32 %v600_v4, %v539_v6 }
 0x280   : > { %v652_v11 = vadd.f32 %v650_v7, %v602_v9 }
 0x282   : > { %653 = vst [vmem:[%s325_s21] sm:$0xff] %v652_v11 }
 0x283   : > { %835 = shalt.err (!%p832_p3)
}
 0x284   : > { %s836_s14 = scalar_lea.hbm %s1132_s25, 128  ;;  %s840_s21 = scalar_lea.hbm %s1183_s9, 256 }
 0x285   : > { %p837_p4 = scmp.ne.s32.totalorder %s1132_s25, %s836_s14  ;;  %p841_p9 = scmp.lt.u32.totalorder %s1132_s25, %s1183_s9 }
 0x286   : > { %p842_p10 = scmp.lt.u32.totalorder %s840_s21, %s836_s14  ;;  %p844_p12 = scmp.lt.u32.totalorder %s836_s14, %s1132_s25 }
 0x287   : > { %p838_p7 = pnand %p837_p4, %p980_p5 }
 0x288   : > { %p843_p11 = por %p842_p10, %p841_p9 }
 0x289   : > { %p839_p8 = pneg %p838_p7 }
 0x28a   : > { %p845_p13 = por %p844_p12, %p843_p11 }
 0x28c   : > { %p846_p0 = pnand %p845_p13, %p839_p8 }
 0x28e   : > { %849 = shalt.err (!%p846_p0)
}
 0x28f   : > { %742 = dma.vmem_to_hbm [thread:$0]  (%p980_p5), %s1134_s22, 128, %s1132_s25, %s655_s26  }
 0x290 PF: > { %p748_p1 = scmp.ge.s32.totalorder %s884_s12, 2  ;;  %s681_s27 = sand.u32 1, %s872_s30  }
 0x291   : > { %s682_s13 = scalar_lea.sflag [#allocation3], %s681_s27 }
 0x292   : > { %p745_p2 = pnand %p748_p1, %p984_p6 }
 0x294   : > { %867 = dma.done.wait (!%p745_p2), %s682_s13, 128  }
 0x295   : > { %869 = vsyncadd (!%p745_p2), %s682_s13, 4294967168  ;;  %p19_p3 = scmp.ge.s32.totalorder %s967_s15, 4   ;;  %s1186_s30 = smov %s876_s10 }
 0x296   : > { %s1187_s10 = smov %s880_s11  ;;  %s1188_s11 = smov %s978_s18 }
 0x297   : > { %s1189_s12 = smov %s967_s15  ;;  %21 = sbr.rel (!%p19_p3) target bundleno = 3 (0x3), region = 91 }
 0x29e   :  { %687 = vsyncpa [#allocation3], 1 }
 0x29f   :  { %689 = vsyncpa [#allocation3 + $0x1], 1 }

</bundles_post_ra>
